<compile_context>
chip_gen: v6e
topology: v6e:2x2x1
jax: 0.10.0
libtpu: 0.0.40
codegen_flags: <defaults>
</compile_context>

<pallas_src>
import jax
import jax.numpy as jnp
from jax.experimental import pallas as pl
from jax.experimental.pallas import tpu as pltpu


def _round_up(x, m):
    return ((x + m - 1) // m) * m


_LANE_MULT = 256                              # vocab padding (256 = v6e/v7x MXU width; 128 suffices on v5e)
_RESIDENT_PLANES_LIMIT = 12 * 1024 * 1024     # bf16-plane bytes we allow to stay VMEM resident


# --------------------------------------------------------------------------- #
# One-time table preparation (module "init")
# --------------------------------------------------------------------------- #
def prepare_embedding_table(embedding_table, *, resident_bytes_limit=_RESIDENT_PLANES_LIMIT):
    """One-time preparation of the (vocab_size + 1, E) f32 embedding table.

    Hoists the vocab padding and the exact 3-plane bf16 split out of the forward
    pass (it is an HBM-sized re-write if done per call). Returns everything the
    forward needs, including whether the planes are small enough to keep VMEM
    resident (one-hot MXU path) or whether the DMA row-gather path should be used.
    """
    vp1, emb = embedding_table.shape
    v_pad = _round_up(vp1, _LANE_MULT)
    planes_bytes = 3 * v_pad * emb * 2
    use_onehot = planes_bytes <= resident_bytes_limit

    planes = None
    if use_onehot:
        tpad = embedding_table.astype(jnp.float32)
        if v_pad != vp1:
            tpad = jnp.pad(tpad, ((0, v_pad - vp1), (0, 0)))   # zero rows, never selected
        # Exact 3-plane bf16 split: table == p0 + p1 + p2 (to <= ~1 f32 ulp).
        p0 = tpad.astype(jnp.bfloat16)
        r1 = tpad - p0.astype(jnp.float32)
        p1 = r1.astype(jnp.bfloat16)
        r2 = r1 - p1.astype(jnp.float32)
        p2 = r2.astype(jnp.bfloat16)
        planes = jnp.stack([p0, p1, p2], axis=0)               # (3, V_pad, E) bf16

    return dict(
        planes=planes,
        table3=embedding_table.reshape(vp1, 1, emb),           # free row-major view for DMA gather
        vocab_plus_1=vp1,
        embedding_size=emb,
        v_pad=v_pad,
        use_onehot=use_onehot,
        out_dtype=embedding_table.dtype,
    )


# --------------------------------------------------------------------------- #
# Kernels
# --------------------------------------------------------------------------- #
def _onehot_gather_kernel(ids_ref, planes_ref, o_ref):
    # ids_ref    : (TM, 1)        int32   token ids for this tile
    # planes_ref : (3, V_pad, E)  bf16    exact 3-plane split of the f32 table
    # o_ref      : (TM, E)        f32     gathered embedding rows
    tm = ids_ref.shape[0]
    v_pad = planes_ref.shape[1]

    ids = ids_ref[...]                                                 # (TM, 1)
    vocab_iota = jax.lax.broadcasted_iota(jnp.int32, (tm, v_pad), 1)   # (TM, V_pad)
    onehot = (ids == vocab_iota).astype(jnp.bfloat16)                  # exact 0/1 in bf16

    # Row selection as 3 native bf16 MXU passes accumulated in f32
    # (vs. 6 passes under Precision.HIGHEST); still matches an f32 gather.
    acc = jnp.dot(onehot, planes_ref[0], preferred_element_type=jnp.float32)
    acc = acc + jnp.dot(onehot, planes_ref[1], preferred_element_type=jnp.float32)
    acc = acc + jnp.dot(onehot, planes_ref[2], preferred_element_type=jnp.float32)
    o_ref[...] = acc.astype(o_ref.dtype)


def _row_gather_kernel(ids_smem_ref, row_ref, o_ref):
    # ids_smem_ref : (T,) int32 in SMEM (scalar prefetch; consumed by the index_maps)
    # row_ref      : (1, 1, E)  table row selected by ids[t], DMA'd in by Pallas
    # o_ref        : (1, 1, E)
    del ids_smem_ref
    o_ref[...] = row_ref[...]


# --------------------------------------------------------------------------- #
# Forward paths
# --------------------------------------------------------------------------- #
def _onehot_path(ids, prepared, t_tokens, token_tile):
    planes = prepared["planes"]                       # (3, V_pad, E) bf16
    _, v_pad, emb = planes.shape

    # Big tiles amortize the ~0.35us/grid-step overhead, but keep >= 2 grid steps
    # when possible (v7x has 2 TensorCores) and bound the (TM, V_pad) one-hot temp.
    tm = min(token_tile, _round_up(pl.cdiv(t_tokens, 2), 8))
    onehot_cap = max(8, ((4 * 1024 * 1024) // (2 * v_pad)) // 8 * 8)
    tm = max(8, min(tm, onehot_cap))
    t_pad = _round_up(t_tokens, tm)

    ids1d = ids
    if t_pad != t_tokens:
        ids1d = jnp.pad(ids1d, (0, t_pad - t_tokens))  # pad slots -> row 0, sliced off below
    ids2d = ids1d.reshape(t_pad, 1)

    # VMEM sizing from actual usage (double-buffered planes + tiles + one-hot temps).
    vmem_needed = (2 * planes.size * 2                 # planes (bf16), double buffered
                   + 2 * tm * 1 * 4                    # ids tiles
                   + 2 * tm * emb * 4                  # out tiles
                   + tm * v_pad * (2 + 4))             # one-hot (bf16) + iota/compare temps
    vmem_limit = int(min(max(int(1.25 * vmem_needed), 32 * 1024 * 1024),
                         56 * 1024 * 1024))            # headroom under v7x's 64 MiB physical

    cost = pl.CostEstimate(
        flops=2 * t_pad * v_pad * emb * 3,
        transcendentals=0,
        bytes_accessed=planes.size * 2 + t_pad * 4 + t_pad * emb * 4,
    )

    out = pl.pallas_call(
        _onehot_gather_kernel,
        out_shape=jax.ShapeDtypeStruct((t_pad, emb), jnp.float32),
        grid_spec=pltpu.PrefetchScalarGridSpec(
            num_scalar_prefetch=0,
            grid=(t_pad // tm,),
            in_specs=[
                pl.BlockSpec((tm, 1), lambda i: (i, 0)),            # ids tile
                pl.BlockSpec((3, v_pad, emb), lambda i: (0, 0, 0)),  # resident table planes
            ],
            out_specs=pl.BlockSpec((tm, emb), lambda i: (i, 0)),
        ),
        compiler_params=pltpu.CompilerParams(
            dimension_semantics=("parallel",),
            vmem_limit_bytes=vmem_limit,
        ),
        cost_estimate=cost,
    )(ids2d, planes)

    if t_pad != t_tokens:
        out = out[:t_tokens]
    return out


def _gather_path(ids, prepared, t_tokens):
    table3 = prepared["table3"]                       # (vocab+1, 1, E), stays in HBM
    emb = table3.shape[-1]

    cost = pl.CostEstimate(
        flops=0,
        transcendentals=0,
        bytes_accessed=t_tokens * emb * table3.dtype.itemsize * 2 + t_tokens * 4,
    )

    out = pl.pallas_call(
        _row_gather_kernel,
        out_shape=jax.ShapeDtypeStruct((t_tokens, 1, emb), table3.dtype),
        grid_spec=pltpu.PrefetchScalarGridSpec(
            num_scalar_prefetch=1,                    # ids -> SMEM, drive the per-row DMA
            grid=(t_tokens,),
            in_specs=[
                # One table row per grid step: block (1, 1, E) whose trailing dims
                # equal the full array dims, at block index (ids[t], 0, 0).
                # Pallas auto-pipelines (prefetches) the row DMAs across steps.
                pl.BlockSpec((1, 1, emb), lambda t, ids_ref: (ids_ref[t], 0, 0)),
            ],
            out_specs=pl.BlockSpec((1, 1, emb), lambda t, ids_ref: (t, 0, 0)),
        ),
        compiler_params=pltpu.CompilerParams(
            dimension_semantics=("arbitrary",),
        ),
        cost_estimate=cost,
    )(ids, table3)
    return out.reshape(t_tokens, emb)


def word_embedding_forward(sentences, prepared, *, token_tile=512, force_gather=False):
    """Pallas equivalent of WordEmbeddingModule.forward.

    sentences : (B, L) integer token ids in [0, vocab_size]
    prepared  : output of prepare_embedding_table (table pad/split hoisted to init)
    returns   : (B, L, E) embeddings (dtype of the table)
    """
    B, L = sentences.shape
    vp1 = prepared["vocab_plus_1"]
    emb = prepared["embedding_size"]
    t_tokens = B * L

    # torch's nn.Embedding raises on out-of-range ids; we clamp instead
    # (also keeps the DMA row gather strictly in bounds).
    ids = jnp.clip(sentences.reshape(t_tokens).astype(jnp.int32), 0, vp1 - 1)

    if prepared["use_onehot"] and not force_gather:
        out2d = _onehot_path(ids, prepared, t_tokens, token_tile)
    else:
        out2d = _gather_path(ids, prepared, t_tokens)
    return out2d.reshape(B, L, emb).astype(prepared["out_dtype"])


# --------------------------------------------------------------------------- #
# Self-test
# --------------------------------------------------------------------------- #
if __name__ == "__main__":
    vocab_size = 50        # table has vocab_size + 1 rows; row 0 = padding_idx
    embedding_size = 32    # E
    batch = 2              # B
    seq = 8                # L

    key = jax.random.PRNGKey(0)
    k_ids, k_tab = jax.random.split(key)

    sentences = jax.random.randint(
        k_ids, (batch, seq), 0, vocab_size + 1, dtype=jnp.int32)

    # nn.Embedding default init ~ N(0,1); padding_idx=0 row zeroed.
    table = jax.random.normal(
        k_tab, (vocab_size + 1, embedding_size), dtype=jnp.float32)
    table = table.at[0].set(0.0)

    prepared = prepare_embedding_table(table)   # once, at "init" time

    # Path 1: VMEM-resident 3-plane one-hot MXU gather (table fits easily here).
    out = jax.block_until_ready(word_embedding_forward(sentences, prepared))

    # Path 2: scalar-prefetch DMA row gather (the scalable big-vocab path).
    out_gather = jax.block_until_ready(
        word_embedding_forward(sentences, prepared, force_gather=True))

    ref = table[sentences]                      # pure-JAX gather reference
    assert out.shape == ref.shape == (batch, seq, embedding_size)
    assert jnp.allclose(out, ref, atol=1e-5, rtol=1e-5), "one-hot path mismatch"
    assert jnp.array_equal(out_gather, ref), "DMA-gather path mismatch"

    print("KERNEL_OK")
</pallas_src>

<mosaic_0001>
module attributes {stable_mosaic.version = 11 : i64} {
  func.func @_onehot_gather_kernel(%arg0: i32, %arg1: memref<8x1xi32, #tpu.memory_space<vmem>>, %arg2: memref<3x256x32xbf16, #tpu.memory_space<vmem>>, %arg3: memref<8x32xf32, #tpu.memory_space<vmem>>) attributes {dimension_semantics = [#tpu.dimension_semantics<parallel>], iteration_bounds = array<i64: 2>, scalar_prefetch = 0 : i64, scratch_operands = 0 : i64, tpu.core_type = #tpu.core_type<tc>, window_params = [{transform_indices = @transform_0, window_bounds = array<i64: 8, 1>}, {pipeline_mode = #tpu.pipeline_mode<synchronous>, transform_indices = @transform_1, window_bounds = array<i64: 3, 256, 32>}, {transform_indices = @transform_2, window_bounds = array<i64: 8, 32>}]} {
    %c0 = arith.constant 0 : index
    %c0_0 = arith.constant 0 : index
    %0 = vector.load %arg1[%c0, %c0_0] : memref<8x1xi32, #tpu.memory_space<vmem>>, vector<8x1xi32>
    %1 = tpu.iota {dimensions = array<i32: 1>} : vector<8x256xi32>
    %2 = vector.broadcast %0 : vector<8x1xi32> to vector<8x256xi32>
    %3 = arith.cmpi eq, %2, %1 : vector<8x256xi32>
    %4 = arith.extui %3 : vector<8x256xi1> to vector<8x256xi32>
    %5 = arith.sitofp %4 : vector<8x256xi32> to vector<8x256xf32>
    %6 = arith.truncf %5 : vector<8x256xf32> to vector<8x256xbf16>
    %c0_1 = arith.constant 0 : index
    %c0_2 = arith.constant 0 : index
    %c0_3 = arith.constant 0 : index
    %7 = vector.load %arg2[%c0_1, %c0_2, %c0_3] : memref<3x256x32xbf16, #tpu.memory_space<vmem>>, vector<1x256x32xbf16>
    %8 = vector.shape_cast %7 : vector<1x256x32xbf16> to vector<256x32xbf16>
    %cst = arith.constant dense<0.000000e+00> : vector<8x32xf32>
    %9 = tpu.matmul %6, %8, %cst {dimension_numbers = #tpu.dot_dimension_numbers<[1], [0], [0], [1], [0, 0, 1, 1], [], []>} : vector<8x256xbf16>, vector<256x32xbf16>, vector<8x32xf32> -> vector<8x32xf32>
    %c1 = arith.constant 1 : index
    %c0_4 = arith.constant 0 : index
    %c0_5 = arith.constant 0 : index
    %10 = vector.load %arg2[%c1, %c0_4, %c0_5] : memref<3x256x32xbf16, #tpu.memory_space<vmem>>, vector<1x256x32xbf16>
    %11 = vector.shape_cast %10 : vector<1x256x32xbf16> to vector<256x32xbf16>
    %cst_6 = arith.constant dense<0.000000e+00> : vector<8x32xf32>
    %12 = tpu.matmul %6, %11, %cst_6 {dimension_numbers = #tpu.dot_dimension_numbers<[1], [0], [0], [1], [0, 0, 1, 1], [], []>} : vector<8x256xbf16>, vector<256x32xbf16>, vector<8x32xf32> -> vector<8x32xf32>
    %13 = arith.addf %9, %12 : vector<8x32xf32>
    %c2 = arith.constant 2 : index
    %c0_7 = arith.constant 0 : index
    %c0_8 = arith.constant 0 : index
    %14 = vector.load %arg2[%c2, %c0_7, %c0_8] : memref<3x256x32xbf16, #tpu.memory_space<vmem>>, vector<1x256x32xbf16>
    %15 = vector.shape_cast %14 : vector<1x256x32xbf16> to vector<256x32xbf16>
    %cst_9 = arith.constant dense<0.000000e+00> : vector<8x32xf32>
    %16 = tpu.matmul %6, %15, %cst_9 {dimension_numbers = #tpu.dot_dimension_numbers<[1], [0], [0], [1], [0, 0, 1, 1], [], []>} : vector<8x256xbf16>, vector<256x32xbf16>, vector<8x32xf32> -> vector<8x32xf32>
    %17 = arith.addf %13, %16 : vector<8x32xf32>
    %c0_10 = arith.constant 0 : index
    %c0_11 = arith.constant 0 : index
    %18 = vector.load %arg3[%c0_10, %c0_11] : memref<8x32xf32, #tpu.memory_space<vmem>>, vector<8x32xf32>
    tpu.vector_store %arg3[%c0_10, %c0_11], %17 {strides = array<i32>} : memref<8x32xf32, #tpu.memory_space<vmem>>, vector<8x32xf32>,
    return
  }
  func.func @transform_0(%arg0: i32) -> (i32, i32) {
    %c0_i32 = arith.constant 0 : i32
    %c0_i32_0 = arith.constant 0 : i32
    return %arg0, %c0_i32 : i32, i32
  }
  func.func @transform_1(%arg0: i32) -> (i32, i32, i32) {
    %c0_i32 = arith.constant 0 : i32
    %c0_i32_0 = arith.constant 0 : i32
    %c0_i32_1 = arith.constant 0 : i32
    %c0_i32_2 = arith.constant 0 : i32
    return %c0_i32, %c0_i32_0, %c0_i32_1 : i32, i32, i32
  }
  func.func @transform_2(%arg0: i32) -> (i32, i32) {
    %c0_i32 = arith.constant 0 : i32
    %c0_i32_0 = arith.constant 0 : i32
    return %arg0, %c0_i32 : i32, i32
  }
}

</mosaic_0001>

<bundles_post_ra>
// kernel: tpu_custom_call.1
= control target key start
LH: loop header
LB: loop body
LE: loop exit
PB: predicated region body
PF: predicated region fallthrough
CT: control target
= control target key end

     0   :  { %7 = vsyncpa [#allocation3], 0  ;;  %s1356_s0 = inlined_call_operand.vmem [shape: s32[16,1], index: 0, kind: input, shape index: {}]   ;;  %s1357_s1 = inlined_call_operand.vmem [shape: bf16[3,256,32], index: 1, kind: input, shape index: {}]   ;;  %s1358_s2 = inlined_call_operand.hbm [shape: f32[16,32], index: 2, kind: output, shape index: {}]  }
   0x1   :  { %9 = vsyncpa [#allocation3 + $0x1], 0  ;;  %s1109_s9 = smov 0   ;;  %s1111_s10 = smov 0  }
   0x2   :  { %s1113_s11 = smov 0   ;;  %s1115_s12 = smov 0  }
   0x3 LB: > { %s1130_s13 = sadd.s32 4294967295, %s1089_s12   ;;  %s737_s14 = sadd.s32 4294967294, %s1089_s12   ;;  %s1089_s12 = sphi %s1115_s12, %s1366_s12   ;;  %s1085_s11 = sphi %s1113_s11, %s1365_s11   ;;  %s1081_s10 = sphi %s1111_s10, %s1364_s10   ;;  %s1077_s9 = sphi %s1109_s9, %s1363_s9  }
   0x4   : > { %s1134_s15 = sadd.s32 1, %s1089_s12   ;;  %s69_s16 = sadd.s32 1, %s1085_s11 }
   0x5   : > { %s66_s17 = ssub.s32 %s1089_s12, %s1134_s15  ;;  %p79_p0 = scmp.ne.s32.totalorder %s1085_s11, %s1081_s10 }
   0x6   : > { %p67_p1 = scmp.eq.s32.totalorder %s66_s17, 0  ;;  %p80_p2 = scmp.eq.s32.totalorder %s1130_s13, 1 }
   0x7   : > { %p85_p3 = scmp.ne.s32.totalorder %s1081_s10, %s1077_s9  ;;  %p86_p4 = scmp.eq.s32.totalorder %s737_s14, 1 }
   0x8   : > { %s1145_s18 = scalar_select %p67_p1, %s1085_s11, %s69_s16  }
   0x9   : > { %p1147_p5 = por %p80_p2, %p79_p0  ;;  %p1151_p6 = por %p86_p4, %p85_p3 }
   0xa   : > { %p740_p7 = scmp.ge.s32.totalorder %s1089_s12, 1  ;;  %p114_p8 = scmp.lt.s32.totalorder %s1089_s12, 3 }
   0xc   : > { %p115_p9 = pnand %p740_p7, %p114_p8 }
   0xd   : > { %p135_p10 = scmp.lt.s32.totalorder (!%p115_p9), %s1130_s13, 1  ;;  %s132_s27 = sand.u32 (!%p115_p9), 1, %s1081_s10  }
   0xe   : > { %118 = sbr.rel (%p115_p9) target bundleno = 395 (0x18b), region = 28  ;;  %s870_s29 = sshll.u32 (!%p115_p9), %s1130_s13, 7 }
   0xf   : > { %s1321_s6 = scalar_lea.hbm (!%p115_p9), %s1358_s2, %s870_s29  ;;  %s665_s7 = scalar_lea.sflag (!%p115_p9), [#allocation3], %s132_s27 }
  0x13   : > { %v1091_v0 = vmov 0   ;;  %v981_v1 = vld [vmem:[%s1357_s1 + $0xf8] sm:$0xff]   ;;  %s136_s23 = scalar_select %p135_p10, %s1130_s13, 1  ;;  %v985_v5 = vld [vmem:[%s1357_s1 + $0xf0] sm:$0xff]   ;;  %v989_v10 = vld [vmem:[%s1357_s1 + $0xe8] sm:$0xff]   ;;  %v141_v35 = vlaneseq  ;;  %vm662_vm4 = vcmask 261120  }
  0x14   : > { %980 = vset.pattern.permute.xlu0 %v1091_v0  ;;  %v982_v2 = vld [vmem:[%s1357_s1 + $0xb8] sm:$0xff]   ;;  %873 = vmatprep.subr.bf16.mxu0 %v981_v1  ;;  %v986_v7 = vld [vmem:[%s1357_s1 + $0xb0] sm:$0xff]   ;;  %v990_v11 = vld [vmem:[%s1357_s1 + $0xa8] sm:$0xff]   ;;  %v1092_v42 = vmov 1.0|1.0   ;;  %s1093_s13 = smov [#allocation2]  }
  0x15   : > { %v983_v3 = vld [vmem:[%s1357_s1 + $0x78] sm:$0xff]   ;;  %s742_s28 = sshll.u32 %s136_s23, 3  ;;  %874 = vmatpush3.bf16.msra.mxu0 %v982_v2  ;;  %v987_v8 = vld [vmem:[%s1357_s1 + $0x70] sm:$0xff]   ;;  %v991_v12 = vld [vmem:[%s1357_s1 + $0x68] sm:$0xff]   ;;  %v142_v36 = vand.u32 127, %v141_v35  ;;  %s1033_s14 = sshll.u32 %s1093_s13, 4  ;;  %s1034_s14 = int_to_ptr.vmem [resolvable:$false] %s1033_s14 }
  0x16   : > { %v984_v4 = vld [vmem:[%s1357_s1 + $0x38] sm:$0xff]   ;;  %s138_s5 = scalar_lea.vmem %s1356_s0, %s742_s28  ;;  %895 = vmatprep.subr.bf16.mxu1 %v983_v3  ;;  %875 = vmatprep.subr.bf16.mxu0 %v985_v5  ;;  %v988_v9 = vld [vmem:[%s1357_s1 + $0x30] sm:$0xff]   ;;  %v992_v13 = vld [vmem:[%s1357_s1 + $0x28] sm:$0xff]   ;;  %s741_s28 = sshll.u32 %s132_s27, 3 }
  0x17   : > { %v140_v6 = vld [vmem:[%s138_s5] sm:$0xff]  ;;  %896 = vmatpush3.bf16.msra.mxu1 %v984_v4  ;;  %v997_v18 = vld [vmem:[%s1357_s1 + $0xd8] sm:$0xff]   ;;  %v1001_v22 = vld [vmem:[%s1357_s1 + $0xd0] sm:$0xff]   ;;  %v143_v37 = vadd.s32 128, %v142_v36  ;;  %s134_s30 = scalar_lea.vmem [#allocation2], %s741_s28  ;;  %s1035_s16 = scalar_lea.vmem %s1034_s14, 256 }
  0x18   : > { %145 = vperm.xlu0 %980, %v140_v6   ;;  %897 = vmatprep.subr.bf16.mxu1 %v987_v8  ;;  %v993_v14 = vld [vmem:[%s1357_s1 + $0xe0] sm:$0xff]   ;;  %v998_v19 = vld [vmem:[%s1357_s1 + $0x98] sm:$0xff]   ;;  %v1002_v23 = vld [vmem:[%s1357_s1 + $0x90] sm:$0xff]   ;;  %s678_s3 = sshll.u32 %s134_s30, 4  ;;  %s679_s3 = int_to_ptr.vmem [resolvable:$true] %s678_s3 }
  0x19   : > { %876 = vmatpush3.bf16.msra.mxu0 %v986_v7  ;;  %v994_v15 = vld [vmem:[%s1357_s1 + $0xa0] sm:$0xff]   ;;  %v999_v20 = vld [vmem:[%s1357_s1 + $0x58] sm:$0xff]   ;;  %v1003_v24 = vld [vmem:[%s1357_s1 + $0x50] sm:$0xff]   ;;  %s1029_s8 = scalar_lea.vmem %s679_s3, 128  ;;  %p1036_p0 = scmp.lt.s32.totalorder %s679_s3, %s1034_s14 }
  0x1a   : > { %877 = vmatprep.subr.bf16.mxu0 %v989_v10  ;;  %v995_v16 = vld [vmem:[%s1357_s1 + $0x60] sm:$0xff]   ;;  %v1000_v21 = vld [vmem:[%s1357_s1 + $0x18] sm:$0xff]   ;;  %v1004_v25 = vld [vmem:[%s1357_s1 + $0x10] sm:$0xff]   ;;  %p1030_p11 = scmp.ne.s32.totalorder %s679_s3, %s1029_s8  ;;  %p1037_p1 = scmp.lt.s32.totalorder %s1035_s16, %s1029_s8 }
  0x1b   : > { %898 = vmatpush3.bf16.msra.mxu1 %v988_v9  ;;  %v996_v17 = vld [vmem:[%s1357_s1 + $0x20] sm:$0xff]   ;;  %v1005_v26 = vld [vmem:[%s1357_s1 + $0xc8] sm:$0xff]   ;;  %v1013_v34 = vld [vmem:[%s1357_s1 + $0x178] sm:$0xff]  }
  0x1c   : > { %899 = vmatprep.subr.bf16.mxu1 %v991_v12  ;;  %v1006_v27 = vld [vmem:[%s1357_s1 + $0x88] sm:$0xff]   ;;  %v1009_v30 = vld [vmem:[%s1357_s1 + $0xc0] sm:$0xff]   ;;  %v1014_v39 = vld [vmem:[%s1357_s1 + $0x138] sm:$0xff]   ;;  %p1031_p12 = pnand %p1030_p11, %p1147_p5  ;;  %p1038_p2 = por %p1037_p1, %p1036_p0 }
  0x1d   : > { %878 = vmatpush3.bf16.msra.mxu0 %v990_v11  ;;  %v1007_v28 = vld [vmem:[%s1357_s1 + $0x48] sm:$0xff]   ;;  %v1010_v31 = vld [vmem:[%s1357_s1 + $0x80] sm:$0xff]   ;;  %v1015_v40 = vld [vmem:[%s1357_s1 + $0x170] sm:$0xff]  }
  0x1e   : > { %879 = vmatprep.subr.bf16.mxu0 %v993_v14  ;;  %v1008_v29 = vld [vmem:[%s1357_s1 + $0x8] sm:$0xff]   ;;  %v1011_v32 = vld [vmem:[%s1357_s1 + $0x40] sm:$0xff]   ;;  %v1016_v43 = vld [vmem:[%s1357_s1 + $0x130] sm:$0xff]   ;;  %p1032_p13 = pneg %p1031_p12 }
  0x1f   : > { %900 = vmatpush3.bf16.msra.mxu1 %v992_v13  ;;  %v1012_v33 = vld [vmem:[%s1357_s1] sm:$0xff]   ;;  %v1017_v44 = vld [vmem:[%s1357_s1 + $0x168] sm:$0xff]   ;;  %v1021_v48 = vld [vmem:[%s1357_s1 + $0x158] sm:$0xff]  }
  0x20   : > { %901 = vmatprep.subr.bf16.mxu1 %v995_v16  ;;  %v1018_v45 = vld [vmem:[%s1357_s1 + $0x128] sm:$0xff]   ;;  %v1019_v46 = vld [vmem:[%s1357_s1 + $0x160] sm:$0xff]   ;;  %v1022_v49 = vld [vmem:[%s1357_s1 + $0x118] sm:$0xff]   ;;  %p1039_p3 = pnand %p1038_p2, %p1032_p13 }
  0x21   : > { %880 = vmatpush3.bf16.msra.mxu0 %v994_v15  ;;  %v1020_v47 = vld [vmem:[%s1357_s1 + $0x120] sm:$0xff]   ;;  %v1023_v50 = vld [vmem:[%s1357_s1 + $0x150] sm:$0xff]   ;;  %v1025_v52 = vld [vmem:[%s1357_s1 + $0x148] sm:$0xff]  }
  0x22   : > { %881 = vmatprep.subr.bf16.mxu0 %v997_v18  ;;  %v1024_v51 = vld [vmem:[%s1357_s1 + $0x110] sm:$0xff]   ;;  %v1026_v53 = vld [vmem:[%s1357_s1 + $0x108] sm:$0xff]   ;;  %v1027_v54 = vld [vmem:[%s1357_s1 + $0x140] sm:$0xff]  }
  0x23   : > { %902 = vmatpush3.bf16.msra.mxu1 %v996_v17  ;;  %v1028_v55 = vld [vmem:[%s1357_s1 + $0x100] sm:$0xff]  }
  0x24   : > { %903 = vmatprep.subr.bf16.mxu1 %v999_v20 }
  0x25   : > { %882 = vmatpush3.bf16.msra.mxu0 %v998_v19 }
  0x26   : > { %883 = vmatprep.subr.bf16.mxu0 %v1001_v22 }
  0x27   : > { %904 = vmatpush3.bf16.msra.mxu1 %v1000_v21 }
  0x28   : > { %905 = vmatprep.subr.bf16.mxu1 %v1003_v24 }
  0x29   : > { %884 = vmatpush3.bf16.msra.mxu0 %v1002_v23 }
  0x2a   : > { %885 = vmatprep.subr.bf16.mxu0 %v1005_v26 }
  0x2b   : > { %906 = vmatpush3.bf16.msra.mxu1 %v1004_v25 }
  0x2c   : > { %907 = vmatprep.subr.bf16.mxu1 %v1007_v28 }
  0x2d   : > { %886 = vmatpush3.bf16.msra.mxu0 %v1006_v27 }
  0x2e   : > { %887 = vmatprep.subr.bf16.mxu0 %v1009_v30 }
  0x2f   : > { %908 = vmatpush3.bf16.msra.mxu1 %v1008_v29 }
  0x30   : > { %909 = vmatprep.subr.bf16.mxu1 %v1011_v32 }
  0x31   : > { %888 = vmatpush3.bf16.msra.mxu0 %v1010_v31 }
  0x32   : > { %917 = vmatprep.subr.bf16.mxu0 %v1013_v34 }
  0x33   : > { %910 = vmatpush3.bf16.msra.mxu1 %v1012_v33 }
  0x93   : > { %v146_v38 = vpop.permute.xlu0 %145 }
  0x94   : > { %vm147_vm0 = vcmp.eq.s32.totalorder %v146_v38, %v142_v36  ;;  %vm148_vm1 = vcmp.eq.s32.totalorder %v146_v38, %v143_v37 }
  0x95   : > { %vm793_vm2 = vmpackc.low %vm148_vm1, %vm148_vm1 }
  0x96   : > { %vm1267_vm3 = vmpackc.low %vm147_vm0, %vm147_vm0  ;;  %794 = vmatprep.mubr.msk.bf16.mxu0 %vm793_vm2, %v1092_v42  ;;  %814 = vmatprep.mubr.msk.bf16.mxu1 %vm793_vm2, %v1092_v42 }
  0x97   : > { %796 = vmatmul.mubr.msk.bf16.vlgmr.msra.gmra.mxu0 %vm1267_vm3, %v1092_v42  ;;  %816 = vmatmul.mubr.msk.bf16.vlgmr.msra.gmra.mxu1 %vm1267_vm3, %v1092_v42 }
  0x98   : > { %918 = vmatpush3.bf16.msra.mxu0 %v1014_v39  ;;  %866 = vmatprep.mubr.msk.bf16.mxu0 %vm793_vm2, %v1092_v42 }
  0x99   : > { %919 = vmatprep.subr.bf16.mxu0 %v1015_v40 }
  0x9c   : > { %920 = vmatpush3.bf16.msra.mxu0 %v1016_v43 }
  0x9d   : > { %921 = vmatprep.subr.bf16.mxu0 %v1017_v44 }
  0xa0   : > { %922 = vmatpush3.bf16.msra.mxu0 %v1018_v45 }
  0xa1   : > { %923 = vmatprep.subr.bf16.mxu0 %v1019_v46 }
  0xa4   : > { %924 = vmatpush3.bf16.msra.mxu0 %v1020_v47 }
  0xa5   : > { %925 = vmatprep.subr.bf16.mxu0 %v1021_v48 }
  0xa8   : > { %926 = vmatpush3.bf16.msra.mxu0 %v1022_v49 }
  0xa9   : > { %927 = vmatprep.subr.bf16.mxu0 %v1023_v50 }
  0xac   : > { %928 = vmatpush3.bf16.msra.mxu0 %v1024_v51 }
  0xad   : > { %929 = vmatprep.subr.bf16.mxu0 %v1025_v52 }
  0xb0   : > { %930 = vmatpush3.bf16.msra.mxu0 %v1026_v53 }
  0xb1   : > { %931 = vmatprep.subr.bf16.mxu0 %v1027_v54 }
  0xb4   : > { %932 = vmatpush3.bf16.msra.mxu0 %v1028_v55 }
  0xb7   : > { %868 = vmatmul.mubr.msk.bf16.vlgmr.msra.gmra.mxu0 %vm1267_vm3, %v1092_v42 }
 0x157   : > { %v889_v56 = vpop.f32.mrf.mxu0  ;;  %v911_v57 = vpop.f32.mrf.mxu1 }
 0x159   : > { %v890_v58 = vpop.f32.mrf.mxu0  ;;  %v912_v59 = vpop.f32.mrf.mxu1 }
 0x15a   : > { %v891_v0 = vadd.f32 %v890_v58, %v889_v56  ;;  %v913_v1 = vadd.f32 %v912_v59, %v911_v57 }
 0x15b   : > { %v892_v60 = vpop.f32.mrf.mxu0  ;;  %v914_v61 = vpop.f32.mrf.mxu1 }
 0x15c   : > { %v487_v4 = vadd.f32 %v913_v1, %v891_v0 }
 0x15d   : > { %v893_v62 = vpop.f32.mrf.mxu0  ;;  %v915_v63 = vpop.f32.mrf.mxu1 }
 0x177   : > { %v933_v2 = vpop.f32.mrf.mxu0 }
 0x179   : > { %v934_v3 = vpop.f32.mrf.mxu0 }
 0x17a   : > { %v935_v5 = vadd.f32 %v934_v3, %v933_v2 }
 0x17b   : > { %v936_v6 = vpop.f32.mrf.mxu0 }
 0x17c   : > { %v661_v7 = vadd.f32 %v935_v5, %v487_v4 }
 0x17d   : > { %v937_v8 = vpop.f32.mrf.mxu0 }
 0x17e   : > { %663 = vst.msk [vmem:[%s134_s30] sm:$0xff] %vm662_vm4, %v661_v7 }
 0x17f   : > { %1042 = shalt.err (!%p1039_p3)
}
 0x180   : > { %s1043_s17 = scalar_lea.hbm %s1321_s6, 128  ;;  %s1047_s23 = scalar_lea.hbm %s1358_s2, 256 }
 0x181   : > { %p1044_p4 = scmp.ne.s32.totalorder %s1321_s6, %s1043_s17  ;;  %p1048_p9 = scmp.lt.s32.totalorder %s1321_s6, %s1358_s2 }
 0x182   : > { %p1049_p10 = scmp.lt.s32.totalorder %s1047_s23, %s1043_s17 }
 0x183   : > { %p1045_p7 = pnand %p1044_p4, %p1147_p5 }
 0x184   : > { %p1050_p11 = por %p1049_p10, %p1048_p9 }
 0x185   : > { %p1046_p8 = pneg %p1045_p7 }
 0x187   : > { %p1051_p12 = pnand %p1050_p11, %p1046_p8 }
 0x189   : > { %1054 = shalt.err (!%p1051_p12)
}
 0x18a   : > { %939 = dma.vmem_to_hbm [thread:$0]  (%p1147_p5), %s679_s3, 128, %s1321_s6, %s665_s7  }
 0x18b PF: > { %p945_p13 = scmp.ge.s32.totalorder %s1089_s12, 2  ;;  %s690_s26 = sand.u32 1, %s1077_s9  }
 0x18c   : > { %s691_s27 = scalar_lea.sflag [#allocation3], %s690_s26 }
 0x18d   : > { %p942_p0 = pnand %p945_p13, %p1151_p6 }
 0x18f   : > { %p943_p1 = pneg %p942_p0 }
 0x191   : > { %1072 = dma.done.wait (%p943_p1), %s691_s27, 128  }
 0x192   : > { %1074 = vsyncadd (%p943_p1), %s691_s27, 4294967168  ;;  %p12_p2 = scmp.ge.s32.totalorder %s1134_s15, 4   ;;  %s1363_s9 = smov %s1081_s10 }
 0x193   : > { %s1364_s10 = smov %s1085_s11  ;;  %s1365_s11 = smov %s1145_s18 }
 0x194   : > { %s1366_s12 = smov %s1134_s15  ;;  %14 = sbr.rel (!%p12_p2) target bundleno = 3 (0x3), region = 65 }
 0x199   :  { %696 = vsyncpa [#allocation3], 1 }
 0x19a   :  { %698 = vsyncpa [#allocation3 + $0x1], 1 }

</bundles_post_ra>
